<compile_context>
chip_gen: v5e
topology: v5e:2x2
jax: 0.10.0
libtpu: 0.0.40
codegen_flags: <defaults>
</compile_context>

<pallas_src>
import functools

import jax
import jax.numpy as jnp
from jax.experimental import pallas as pl
from jax.experimental.pallas import tpu as pltpu


def _round_up(x, m):
    return ((x + m - 1) // m) * m


def _cdiv(a, b):
    return (a + b - 1) // b


def _double_q_kernel(x_ref, w_ref, w3_ref, b_ref, out_ref, *, d, r_w2, hp):
    """One batch-tile of the fused double-Q forward pass.

    x_ref:   [TB, D]    bf16 concatenated (obs | action) tile
    w_ref:   [rows, Hp] bf16 packed weight slab
                        rows [0, D)           -> W1 (fused Q1|Q2 along lanes)
                        rows [r_w2, r_w2+Hp)  -> W2 (block-diagonal Q1/Q2)
    w3_ref:  [Hp, 128]  bf16 layer-3 weights (col 0 = Q1, col 1 = Q2, rest 0)
    b_ref:   [3, Hp]    f32 packed biases (b1 | b2 | b3-in-first-2-cols)
    out_ref: [TB, 128]  f32 lane-dense output; cols 0/1 hold (q1, q2)
    """
    x = x_ref[...]                                 # bf16 [TB, D]
    w1 = w_ref[0:d, :]                             # bf16 [D, Hp]
    w2 = w_ref[r_w2:r_w2 + hp, :]                  # bf16 [Hp, Hp]
    w3 = w3_ref[...]                               # bf16 [Hp, 128]
    b = b_ref[...]                                 # f32  [3, Hp]

    # Layer 1: one matmul over the concatenated (obs|action) input.
    h = jnp.dot(x, w1, preferred_element_type=jnp.float32)
    h = jnp.maximum(h + b[0:1, :], 0.0)            # ReLU in f32 (VPU)

    # Layer 2: block-diagonal fused Q1/Q2 hidden layer.
    h = jnp.dot(h.astype(jnp.bfloat16), w2, preferred_element_type=jnp.float32)
    h = jnp.maximum(h + b[1:2, :], 0.0)

    # Layer 3: [TB, Hp] @ [Hp, 128] -> lane-dense output, cols 0/1 valid.
    q = jnp.dot(h.astype(jnp.bfloat16), w3, preferred_element_type=jnp.float32)
    out_ref[...] = q + b[2:3, 0:128]


def init_double_q_params(key, obs_dim, action_dim, hidden_dim):
    """Deterministic synthetic parameters for Q1/Q2 (hidden_depth=2)."""
    in_dim = obs_dim + action_dim
    shapes = [  # (W, b) per layer: in -> hidden -> hidden -> 1
        ((in_dim, hidden_dim), (1, hidden_dim)),
        ((hidden_dim, hidden_dim), (1, hidden_dim)),
        ((hidden_dim, 1), (1, 1)),
    ]
    params = {}
    for net in ("q1", "q2"):
        net_params = []
        for (w_shape, b_shape) in shapes:
            key, kw = jax.random.split(key)
            fan_in = w_shape[0]
            w = jax.random.normal(kw, w_shape, jnp.float32) / jnp.sqrt(float(fan_in))
            b = jnp.zeros(b_shape, jnp.float32)    # utils.weight_init: bias -> 0
            net_params += [w, b]
        params[net] = tuple(net_params)
    return params


def pack_double_q_params(params, obs_dim, action_dim, hidden_dim):
    """Fuse Q1/Q2: one bf16 W1/W2 slab, a small bf16 W3 slab, one f32 bias slab."""
    H = hidden_dim
    D = obs_dim + action_dim
    Hp = _round_up(2 * H, 128)                     # fused hidden width, lane-aligned

    w1a, b1a, w2a, b2a, w3a, b3a = params["q1"]
    w1b, b1b, w2b, b2b, w3b, b3b = params["q2"]

    # Section starts 16-row aligned (bf16 packs 2 rows / sublane).
    r_w2 = _round_up(D, 16)
    rows = r_w2 + Hp

    slab = jnp.zeros((rows, Hp), jnp.float32)
    # Fused layer-1: rows [0, D); cols [0,H)=Q1, [H,2H)=Q2, rest zero.
    slab = slab.at[0:D, 0:H].set(w1a).at[0:D, H:2 * H].set(w1b)
    # Fused block-diagonal layer-2: rows [r_w2, r_w2+Hp).
    slab = slab.at[r_w2:r_w2 + H, 0:H].set(w2a)
    slab = slab.at[r_w2 + H:r_w2 + 2 * H, H:2 * H].set(w2b)
    w_slab = slab.astype(jnp.bfloat16)             # bf16 MXU operands

    # Layer-3 kept separate and lane-trimmed to 128 cols (col 0 = q1, col 1 = q2).
    w3 = jnp.zeros((Hp, 128), jnp.float32)
    w3 = w3.at[0:H, 0:1].set(w3a).at[H:2 * H, 1:2].set(w3b)
    w3_slab = w3.astype(jnp.bfloat16)

    b_slab = jnp.zeros((3, Hp), jnp.float32)       # biases stay f32
    b_slab = b_slab.at[0, 0:H].set(b1a[0]).at[0, H:2 * H].set(b1b[0])
    b_slab = b_slab.at[1, 0:H].set(b2a[0]).at[1, H:2 * H].set(b2b[0])
    b_slab = b_slab.at[2, 0].set(b3a[0, 0]).at[2, 1].set(b3b[0, 0])
    return w_slab, w3_slab, b_slab


def _pick_tb(B):
    """Batch tile: >= 2 grid steps for B > 16 (v7x megacore), capped at 512 rows."""
    if B <= 16:
        return _round_up(B, 8)
    # v6e/v5e (128 MiB VMEM) could use larger tiles (1024-2048) for very large B.
    return min(512, _round_up(_cdiv(B, 2), 8))


@jax.jit
def double_q_forward(obs, action, w_slab, w3_slab, b_slab):
    """Pallas-backed DoubleQCritic.forward. Returns (q1, q2), each [B, 1] f32."""
    assert obs.shape[0] == action.shape[0]
    B, obs_dim = obs.shape
    _, action_dim = action.shape
    D = obs_dim + action_dim
    rows, Hp = w_slab.shape
    r_w2 = _round_up(D, 16)
    assert rows == r_w2 + Hp, "weight slab layout does not match input dims"

    tb = _pick_tb(B)
    Bp = _round_up(B, tb)
    grid = (Bp // tb,)

    # Single bf16 (obs|action) input; concat + cast (+ tail pad) fuse under jit.
    x = jnp.concatenate([obs, action], axis=-1).astype(jnp.bfloat16)
    if Bp != B:
        x = jnp.pad(x, ((0, Bp - B), (0, 0)))

    # VMEM budget: single-buffered weights + double-buffered activation tiles
    # + f32 intermediates; clamp to [16 MiB, 64 MiB] (v7x physical ceiling).
    weight_bytes = rows * Hp * 2 + Hp * 128 * 2 + 3 * Hp * 4
    stream_bytes = 2 * (tb * D * 2) + 2 * (tb * 128 * 4)
    scratch_bytes = 4 * tb * Hp * 4
    need = weight_bytes + stream_bytes + scratch_bytes
    vmem_limit = int(min(max(2 * need, 16 << 20), 64 << 20))

    kernel = functools.partial(_double_q_kernel, d=D, r_w2=r_w2, hp=Hp)

    q12 = pl.pallas_call(
        kernel,
        out_shape=jax.ShapeDtypeStruct((Bp, 128), jnp.float32),
        grid_spec=pl.GridSpec(
            grid=grid,
            in_specs=[
                pl.BlockSpec((tb, D), lambda i: (i, 0)),
                # Resident weights/biases: constant index map -> single-buffer.
                pl.BlockSpec((rows, Hp), lambda i: (0, 0),
                             pipeline_mode=pl.Buffered(1)),
                pl.BlockSpec((Hp, 128), lambda i: (0, 0),
                             pipeline_mode=pl.Buffered(1)),
                pl.BlockSpec((3, Hp), lambda i: (0, 0),
                             pipeline_mode=pl.Buffered(1)),
            ],
            out_specs=pl.BlockSpec((tb, 128), lambda i: (i, 0)),
        ),
        compiler_params=pltpu.CompilerParams(
            dimension_semantics=("parallel",),
            vmem_limit_bytes=vmem_limit),
    )(x, w_slab, w3_slab, b_slab)

    q12 = q12[:B]
    return q12[:, 0:1], q12[:, 1:2]


def _reference_forward(obs, action, params):
    """Pure-JAX f32 reference (matches the PyTorch module)."""
    x = jnp.concatenate([obs, action], axis=-1).astype(jnp.float32)

    def mlp3(p):
        w1, b1, w2, b2, w3, b3 = p
        h = jnp.maximum(x @ w1 + b1, 0.0)
        h = jnp.maximum(h @ w2 + b2, 0.0)
        return h @ w3 + b3

    return mlp3(params["q1"]), mlp3(params["q2"])


if __name__ == "__main__":
    # Small shapes consistent with the module's forward (hidden_depth=2).
    batch = 8
    obs_dim = 24
    action_dim = 8
    hidden_dim = 32

    key = jax.random.PRNGKey(0)
    k_obs, k_act, k_params = jax.random.split(key, 3)
    obs = jax.random.normal(k_obs, (batch, obs_dim), jnp.float32)
    action = jax.random.normal(k_act, (batch, action_dim), jnp.float32)
    params = init_double_q_params(k_params, obs_dim, action_dim, hidden_dim)

    w_slab, w3_slab, b_slab = pack_double_q_params(
        params, obs_dim, action_dim, hidden_dim)

    q1, q2 = double_q_forward(obs, action, w_slab, w3_slab, b_slab)
    q1 = jax.block_until_ready(q1)
    q2 = jax.block_until_ready(q2)

    r1, r2 = _reference_forward(obs, action, params)
    assert q1.shape == (batch, 1) and q2.shape == (batch, 1)
    # bf16 MXU operands vs f32 reference -> loose-but-meaningful tolerance.
    # TODO(synk): keep an f32 (or f32-W3) path if this critic feeds TD targets.
    assert jnp.allclose(q1, r1, atol=3e-2, rtol=3e-2)
    assert jnp.allclose(q2, r2, atol=3e-2, rtol=3e-2)

    print("KERNEL_OK")
</pallas_src>

<mosaic_0001>
module attributes {stable_mosaic.version = 11 : i64} {
  func.func @_double_q_kernel(%arg0: i32, %arg1: memref<8x32xbf16, #tpu.memory_space<vmem>>, %arg2: memref<160x128xbf16, #tpu.memory_space<vmem>>, %arg3: memref<128x128xbf16, #tpu.memory_space<vmem>>, %arg4: memref<3x128xf32, #tpu.memory_space<vmem>>, %arg5: memref<8x128xf32, #tpu.memory_space<vmem>>) attributes {dimension_semantics = [#tpu.dimension_semantics<parallel>], iteration_bounds = array<i64: 1>, scalar_prefetch = 0 : i64, scratch_operands = 0 : i64, tpu.core_type = #tpu.core_type<tc>, window_params = [{transform_indices = @transform_0, window_bounds = array<i64: 8, 32>}, {pipeline_mode = #tpu.pipeline_mode<synchronous>, transform_indices = @transform_1, window_bounds = array<i64: 160, 128>}, {pipeline_mode = #tpu.pipeline_mode<synchronous>, transform_indices = @transform_2, window_bounds = array<i64: 128, 128>}, {pipeline_mode = #tpu.pipeline_mode<synchronous>, transform_indices = @transform_3, window_bounds = array<i64: 3, 128>}, {transform_indices = @transform_4, window_bounds = array<i64: 8, 128>}]} {
    %c0 = arith.constant 0 : index
    %c0_0 = arith.constant 0 : index
    %0 = vector.load %arg1[%c0, %c0_0] : memref<8x32xbf16, #tpu.memory_space<vmem>>, vector<8x32xbf16>
    %c0_1 = arith.constant 0 : index
    %c0_2 = arith.constant 0 : index
    %1 = vector.load %arg2[%c0_1, %c0_2] : memref<160x128xbf16, #tpu.memory_space<vmem>>, vector<32x128xbf16>
    %c32 = arith.constant 32 : index
    %c0_3 = arith.constant 0 : index
    %2 = vector.load %arg2[%c32, %c0_3] : memref<160x128xbf16, #tpu.memory_space<vmem>>, vector<128x128xbf16>
    %c0_4 = arith.constant 0 : index
    %c0_5 = arith.constant 0 : index
    %3 = vector.load %arg3[%c0_4, %c0_5] : memref<128x128xbf16, #tpu.memory_space<vmem>>, vector<128x128xbf16>
    %c0_6 = arith.constant 0 : index
    %c0_7 = arith.constant 0 : index
    %4 = vector.load %arg4[%c0_6, %c0_7] : memref<3x128xf32, #tpu.memory_space<vmem>>, vector<3x128xf32>
    %cst = arith.constant dense<0.000000e+00> : vector<8x128xf32>
    %5 = tpu.matmul %0, %1, %cst {dimension_numbers = #tpu.dot_dimension_numbers<[1], [0], [0], [1], [0, 0, 1, 1], [], []>} : vector<8x32xbf16>, vector<32x128xbf16>, vector<8x128xf32> -> vector<8x128xf32>
    %6 = vector.extract_strided_slice %4 {offsets = [0, 0], sizes = [1, 128], strides = [1, 1]} : vector<3x128xf32> to vector<1x128xf32>
    %7 = vector.broadcast %6 : vector<1x128xf32> to vector<8x128xf32>
    %8 = arith.addf %5, %7 : vector<8x128xf32>
    %cst_8 = arith.constant 0.000000e+00 : f32
    %9 = vector.broadcast %cst_8 : f32 to vector<8x128xf32>
    %10 = arith.maximumf %8, %9 : vector<8x128xf32>
    %11 = arith.truncf %10 : vector<8x128xf32> to vector<8x128xbf16>
    %cst_9 = arith.constant dense<0.000000e+00> : vector<8x128xf32>
    %12 = tpu.matmul %11, %2, %cst_9 {dimension_numbers = #tpu.dot_dimension_numbers<[1], [0], [0], [1], [0, 0, 1, 1], [], []>} : vector<8x128xbf16>, vector<128x128xbf16>, vector<8x128xf32> -> vector<8x128xf32>
    %13 = vector.extract_strided_slice %4 {offsets = [1, 0], sizes = [1, 128], strides = [1, 1]} : vector<3x128xf32> to vector<1x128xf32>
    %14 = vector.broadcast %13 : vector<1x128xf32> to vector<8x128xf32>
    %15 = arith.addf %12, %14 : vector<8x128xf32>
    %cst_10 = arith.constant 0.000000e+00 : f32
    %16 = vector.broadcast %cst_10 : f32 to vector<8x128xf32>
    %17 = arith.maximumf %15, %16 : vector<8x128xf32>
    %18 = arith.truncf %17 : vector<8x128xf32> to vector<8x128xbf16>
    %cst_11 = arith.constant dense<0.000000e+00> : vector<8x128xf32>
    %19 = tpu.matmul %18, %3, %cst_11 {dimension_numbers = #tpu.dot_dimension_numbers<[1], [0], [0], [1], [0, 0, 1, 1], [], []>} : vector<8x128xbf16>, vector<128x128xbf16>, vector<8x128xf32> -> vector<8x128xf32>
    %20 = vector.extract_strided_slice %4 {offsets = [2, 0], sizes = [1, 128], strides = [1, 1]} : vector<3x128xf32> to vector<1x128xf32>
    %21 = vector.broadcast %20 : vector<1x128xf32> to vector<8x128xf32>
    %22 = arith.addf %19, %21 : vector<8x128xf32>
    %c0_12 = arith.constant 0 : index
    %c0_13 = arith.constant 0 : index
    %23 = vector.load %arg5[%c0_12, %c0_13] : memref<8x128xf32, #tpu.memory_space<vmem>>, vector<8x128xf32>
    tpu.vector_store %arg5[%c0_12, %c0_13], %22 {strides = array<i32>} : memref<8x128xf32, #tpu.memory_space<vmem>>, vector<8x128xf32>,
    return
  }
  func.func @transform_0(%arg0: i32) -> (i32, i32) {
    %c0_i32 = arith.constant 0 : i32
    %c0_i32_0 = arith.constant 0 : i32
    return %arg0, %c0_i32 : i32, i32
  }
  func.func @transform_1(%arg0: i32) -> (i32, i32) {
    %c0_i32 = arith.constant 0 : i32
    %c0_i32_0 = arith.constant 0 : i32
    %c0_i32_1 = arith.constant 0 : i32
    return %c0_i32, %c0_i32_0 : i32, i32
  }
  func.func @transform_2(%arg0: i32) -> (i32, i32) {
    %c0_i32 = arith.constant 0 : i32
    %c0_i32_0 = arith.constant 0 : i32
    %c0_i32_1 = arith.constant 0 : i32
    return %c0_i32, %c0_i32_0 : i32, i32
  }
  func.func @transform_3(%arg0: i32) -> (i32, i32) {
    %c0_i32 = arith.constant 0 : i32
    %c0_i32_0 = arith.constant 0 : i32
    %c0_i32_1 = arith.constant 0 : i32
    return %c0_i32, %c0_i32_0 : i32, i32
  }
  func.func @transform_4(%arg0: i32) -> (i32, i32) {
    %c0_i32 = arith.constant 0 : i32
    %c0_i32_0 = arith.constant 0 : i32
    return %arg0, %c0_i32 : i32, i32
  }
}

</mosaic_0001>

<bundles_post_ra>
// kernel: double_q_forward.1
= control target key start
LH: loop header
LB: loop body
LE: loop exit
PB: predicated region body
PF: predicated region fallthrough
CT: control target
= control target key end

     0   :  { %9 = vsyncpa [#allocation3], 0  ;;  %s444_s0 = inlined_call_operand.vmem [shape: bf16[8,32], index: 0, kind: input, shape index: {}]   ;;  %s445_s1 = inlined_call_operand.hbm [shape: bf16[160,128], index: 1, kind: input, shape index: {}]   ;;  %s446_s2 = inlined_call_operand.hbm [shape: bf16[128,128], index: 2, kind: input, shape index: {}]   ;;  %s447_s3 = inlined_call_operand.vmem [shape: f32[3,128], index: 3, kind: input, shape index: {}]   ;;  %s448_s4 = inlined_call_operand.vmem [shape: f32[8,128], index: 4, kind: output, shape index: {}]  }
   0x1   :  { %s17_s17 = sshll.u32 %s445_s1, 4  ;;  %s18_s17 = int_to_ptr.hbm [resolvable:$true] %s17_s17 }
   0x2   :  { %10 = vsyncpa [#allocation5], 0  ;;  %s400_s18 = smov [#allocation2]   ;;  %s30_s22 = sshll.u32 %s446_s2, 4  ;;  %s31_s22 = int_to_ptr.hbm [resolvable:$true] %s30_s22 }
   0x3   :  { %s19_s19 = sshll.u32 %s400_s18, 4  ;;  %s401_s23 = smov 64   ;;  %s20_s19 = int_to_ptr.vmem [resolvable:$true] %s19_s19 }
   0x4   :  { %s402_s24 = smov 4   ;;  %s403_s25 = smov [#allocation4]  }
   0x5   :  { %25 = dma.hbm_to_vmem [thread:$0]  %s18_s17, 1280, %s20_s19, [#allocation3], %s401_s23, %s401_s23, %s402_s24  }
   0x6   :  { %s32_s26 = sshll.u32 %s403_s25, 4  ;;  %s33_s26 = int_to_ptr.vmem [resolvable:$true] %s32_s26 }
   0x7   :  { %38 = dma.hbm_to_vmem [thread:$0]  %s31_s22, 1024, %s33_s26, [#allocation5], %s401_s23, %s401_s23, %s402_s24  }
   0x8   :  { %396 = dma.done.wait [#allocation3], 1280  }
   0x9   :  { %397 = vsyncadd [#allocation3], 4294966016 }
   0xa   :  { %398 = dma.done.wait [#allocation5], 1024  }
   0xb   :  { %399 = vsyncadd [#allocation5], 4294966272  ;;  %v327_v0 = vld [vmem:[#allocation2 + $0x8] sm:$0xff]  ;;  %v326_v2 = vld [vmem:[#allocation2] sm:$0xff]  ;;  %vm101_vm0 = vcmask 261120  }
   0xc   :  { %v335_v1 = vld [vmem:[#allocation2 + $0x48] sm:$0xff]  ;;  %111 = vmatpush.bf16.msra.mxu0 %v327_v0  ;;  %v334_v3 = vld [vmem:[#allocation2 + $0x40] sm:$0xff]  ;;  %v333_v5 = vld [vmem:[#allocation2 + $0x38] sm:$0xff] }
   0xd   :  { %169 = vmatpush.bf16.msra.mxu1 %v335_v1  ;;  %v50_v4 = vld [vmem:[%s444_s0] sm:$0xf]  ;;  %v332_v6 = vld [vmem:[#allocation2 + $0x30] sm:$0xff]  ;;  %v331_v7 = vld [vmem:[#allocation2 + $0x28] sm:$0xff] }
   0xe   :  { %v330_v8 = vld [vmem:[#allocation2 + $0x20] sm:$0xff]  ;;  %v329_v9 = vld [vmem:[#allocation2 + $0x18] sm:$0xff]  ;;  %v328_v10 = vld [vmem:[#allocation2 + $0x10] sm:$0xff] }
   0xf   :  { %v343_v11 = vld [vmem:[#allocation4 + $0x38] sm:$0xff]  ;;  %v342_v12 = vld [vmem:[#allocation4 + $0x30] sm:$0xff]  ;;  %v341_v13 = vld [vmem:[#allocation4 + $0x28] sm:$0xff] }
  0x10   :  { %112 = vmatpush.bf16.msra.mxu0 %v326_v2  ;;  %233 = vmatpush.bf16.msra.mxu2 %v343_v11  ;;  %v340_v14 = vld [vmem:[#allocation4 + $0x20] sm:$0xff]  ;;  %v339_v15 = vld [vmem:[#allocation4 + $0x18] sm:$0xff]  ;;  %v87_v16 = vld [vmem:[%s447_s3] sm:$0x7] }
  0x11   :  { %170 = vmatpush.bf16.msra.mxu1 %v334_v3  ;;  %v338_v17 = vld [vmem:[#allocation4 + $0x10] sm:$0xff]  ;;  %v88_v18 = vperm.slane %v87_v16, 0  ;;  %v337_v24 = vld [vmem:[#allocation4 + $0x8] sm:$0xff]  ;;  %v336_v25 = vld [vmem:[#allocation4] sm:$0xff]  ;;  %v120_v26 = vperm.slane %v87_v16, 1  ;;  %v184_v32 = vperm.slane %v87_v16, 2 }
  0x13   :  { %261 = vmatmul.msk.bf16.vlgmr.msra.gmra.mxu0 %vm101_vm0, %v50_v4 }
  0x14   :  { %234 = vmatpush.bf16.msra.mxu2 %v342_v12 }
  0x15   :  { %171 = vmatpush.bf16.msra.mxu1 %v333_v5 }
  0x18   :  { %235 = vmatpush.bf16.msra.mxu2 %v341_v13 }
  0x19   :  { %172 = vmatpush.bf16.msra.mxu1 %v332_v6 }
  0x1c   :  { %236 = vmatpush.bf16.msra.mxu2 %v340_v14 }
  0x1d   :  { %173 = vmatpush.bf16.msra.mxu1 %v331_v7 }
  0x20   :  { %237 = vmatpush.bf16.msra.mxu2 %v339_v15 }
  0x21   :  { %174 = vmatpush.bf16.msra.mxu1 %v330_v8 }
  0x24   :  { %238 = vmatpush.bf16.msra.mxu2 %v338_v17 }
  0x25   :  { %175 = vmatpush.bf16.msra.mxu1 %v329_v9 }
  0x28   :  { %239 = vmatpush.bf16.msra.mxu2 %v337_v24 }
  0x29   :  { %176 = vmatpush.bf16.msra.mxu1 %v328_v10 }
  0x2c   :  { %240 = vmatpush.bf16.msra.mxu2 %v336_v25 }
  0x90   :  { %v114_v19 = vpop.f32.mrf.mxu0 }
  0x91   :  { %v115_v20 = vadd.f32 %v114_v19, %v88_v18 }
  0x93   :  { %v118_v21 = vmax.f32 %v115_v20, 0.0 }
  0x95   :  { %v119_v22 = vpack.c.bf16 %v118_v21, %v118_v21 }
  0x97   :  { %177 = vmatmul.bf16.vlgmr.msra.gmra.mxu1 %v119_v22 }
  0x98   :  { %v116_v23 = vpop.f32.mrf.mxu0 }
 0x114   :  { %v178_v27 = vpop.f32.mrf.mxu1 }
 0x115   :  { %v179_v28 = vadd.f32 %v178_v27, %v120_v26 }
 0x117   :  { %v182_v29 = vmax.f32 %v179_v28, 0.0 }
 0x119   :  { %v183_v30 = vpack.c.bf16 %v182_v29, %v182_v29 }
 0x11b   :  { %241 = vmatmul.bf16.vlgmr.msra.gmra.mxu2 %v183_v30 }
 0x11c   :  { %v180_v31 = vpop.f32.mrf.mxu1 }
 0x19e   :  { %v242_v33 = vpop.f32.mrf.mxu2 }
 0x19f   :  { %v243_v34 = vadd.f32 %v242_v33, %v184_v32 }
 0x1a1   :  { %246 = vst [vmem:[%s448_s4] sm:$0xff] %v243_v34 }
 0x1a6   :  { %v244_v35 = vpop.f32.mrf.mxu2 }
 0x1a7   :  { %251 = vsyncpa [#allocation3], 1 }
 0x1a8   :  { %252 = vsyncpa [#allocation5], 1 }

</bundles_post_ra>
